<compile_context>
chip_gen: v7x
topology: tpu7x:2x2x1
jax: 0.10.0
libtpu: 0.0.40
codegen_flags: <defaults>
</compile_context>

<pallas_src>
import jax
import jax.numpy as jnp
from jax.experimental import pallas as pl
from jax.experimental.pallas import tpu as pltpu


def _round_up(x, m):
    return (x + m - 1) // m * m


def _decision_attn_kernel(x_ref, w_ref, b_ref, t_ref, o_ref):
    a_pad = t_ref.shape[-1]

    # One fused MXU matmul: [TB, D1+D4] @ [D1+D4, 2*A_pad] -> [p1 | p4].
    proj = jnp.dot(x_ref[...], w_ref[...], preferred_element_type=jnp.float32)
    proj = jnp.maximum(proj + b_ref[...], 0.0)          # [TB, 2*A_pad], f32
    p1 = proj[:, :a_pad]                                # [TB, A_pad]
    p4 = proj[:, a_pad:]                                # [TB, A_pad]

    # tlinear scores: dot with context vector t (bias-free). Padded lanes of t
    # are zero, so they contribute nothing to the scores.
    t = t_ref[...]                                      # [1, A_pad], f32
    s1 = jnp.sum(p1 * t, axis=-1, keepdims=True)        # [TB, 1]
    s4 = jnp.sum(p4 * t, axis=-1, keepdims=True)        # [TB, 1]

    # Numerically-stable 2-way softmax; reciprocal on the EUP slot.
    m = jnp.maximum(s1, s4)
    e1 = jnp.exp(s1 - m)
    e4 = jnp.exp(s4 - m)
    inv = pl.reciprocal(e1 + e4, approx=True)
    w1 = e1 * inv
    w4 = e4 * inv

    # weights.unsqueeze(1).bmm(hiddens).squeeze(1) == weighted sum of the two
    # projected vectors. Output tile is lane-dense (A_pad multiple of 128).
    o_ref[...] = (w1 * p1 + w4 * p4).astype(o_ref.dtype)


def decision_level_attention(x1, x4, wu, bu, wv, bv, t, *, block_b=1024):
    """x1: [B, D1], x4: [B, D4]; wu: [D1, A], wv: [D4, A] (pre-transposed so
    the kernel does x @ W); bu/bv/t: [1, A].  Returns [B, A] float32."""
    B, D1 = x1.shape
    D4 = x4.shape[1]
    A = wu.shape[1]
    D = D1 + D4
    A_pad = _round_up(A, 128)            # lane-dense output tiles

    # ---- one-time wrapper-side parameter prep -------------------------------
    # Block-diagonal fused projection weight [[Wu, 0], [0, Wv]] : [D, 2*A_pad].
    w = jnp.zeros((D, 2 * A_pad), jnp.float32)
    w = w.at[:D1, :A].set(wu.astype(jnp.float32))
    w = w.at[D1:, A_pad:A_pad + A].set(wv.astype(jnp.float32))
    b = jnp.zeros((1, 2 * A_pad), jnp.float32)
    b = b.at[:, :A].set(bu.astype(jnp.float32))
    b = b.at[:, A_pad:A_pad + A].set(bv.astype(jnp.float32))
    t_pad = jnp.zeros((1, A_pad), jnp.float32).at[:, :A].set(
        t.astype(jnp.float32))

    # bf16 MXU inputs (f32 accumulation inside the kernel halves HBM traffic
    # for the dominant input stream on all generations).
    x = jnp.concatenate([x1, x4], axis=1).astype(jnp.bfloat16)    # [B, D]
    w = w.astype(jnp.bfloat16)

    # ---- batch tiling -------------------------------------------------------
    # block_b=1024 fits comfortably on v5e/v6e (128 MiB VMEM) and v7x (64 MiB):
    # per step ~ TB*(D*2B + 3*A_pad*4B) * 2 buffers ≈ a few MiB at TB=1024.
    # On v5e/v6e it can be raised to 2048-8192 for a slightly better HBM
    # roofline; 1024 is a safe cross-generation default.
    TB = min(block_b, _round_up(B, 8))
    Bp = _round_up(B, TB)
    if Bp != B:
        x = jnp.pad(x, ((0, Bp - B), (0, 0)))
    grid = (Bp // TB,)

    out = pl.pallas_call(
        _decision_attn_kernel,
        out_shape=jax.ShapeDtypeStruct((Bp, A_pad), jnp.float32),
        grid_spec=pltpu.PrefetchScalarGridSpec(
            num_scalar_prefetch=0,
            grid=grid,
            in_specs=[
                pl.BlockSpec((TB, D), lambda i: (i, 0)),           # x tile
                pl.BlockSpec((D, 2 * A_pad), lambda i: (0, 0)),    # fused W
                pl.BlockSpec((1, 2 * A_pad), lambda i: (0, 0)),    # fused bias
                pl.BlockSpec((1, A_pad), lambda i: (0, 0)),        # context t
            ],
            out_specs=pl.BlockSpec((TB, A_pad), lambda i: (i, 0)),
        ),
        compiler_params=pltpu.CompilerParams(
            dimension_semantics=("parallel",),   # megacore split on v7x
            vmem_limit_bytes=32 * 1024 * 1024,   # explicit; safe on v5e/v6e/v7x
        ),
    )(x, w, b, t_pad)

    return out[:B, :A]


def reference(x1, x4, wu, bu, wv, bv, t):
    """Pure-f32 module semantics."""
    p1 = jax.nn.relu(x1 @ wu + bu)
    p4 = jax.nn.relu(x4 @ wv + bv)
    scores = jnp.concatenate(
        [jnp.sum(p1 * t, -1, keepdims=True),
         jnp.sum(p4 * t, -1, keepdims=True)], axis=1)              # [B, 2]
    w = jax.nn.softmax(scores, axis=-1)
    hiddens = jnp.stack([p1, p4], axis=1)                          # [B, 2, A]
    return jnp.einsum("bk,bka->ba", w, hiddens)


if __name__ == "__main__":
    # Small shapes consistent with the module:
    #   opt['hidden_dim_cnn'] = 16 -> x1 feature dim = 32
    #   opt['hidden_dim']     = 32 -> x4 feature dim = 32
    #   attn_size             = 32
    B, D1, D4, A = 2, 32, 32, 32

    key = jax.random.PRNGKey(0)
    k1, k2, k3, k4, k5, k6, k7 = jax.random.split(key, 7)

    x1 = jax.random.normal(k1, (B, D1), dtype=jnp.float32)
    x4 = jax.random.normal(k2, (B, D4), dtype=jnp.float32)

    # Deterministic parameter init (ulinear/vlinear: normal std=0.001 like the
    # module's init_weights; biases uniform like nn.Linear defaults).
    wu = 0.001 * jax.random.normal(k3, (D1, A), dtype=jnp.float32)  # [in, attn]
    wv = 0.001 * jax.random.normal(k4, (D4, A), dtype=jnp.float32)
    bu = jax.random.uniform(k5, (1, A), jnp.float32, -1.0 / jnp.sqrt(D1),
                            1.0 / jnp.sqrt(D1))
    bv = jax.random.uniform(k6, (1, A), jnp.float32, -1.0 / jnp.sqrt(D4),
                            1.0 / jnp.sqrt(D4))
    # The module zeros tlinear.weight; we use small nonzero values so the
    # softmax path is actually exercised (semantics are identical).
    t = 0.01 * jax.random.normal(k7, (1, A), dtype=jnp.float32)

    out = decision_level_attention(x1, x4, wu, bu, wv, bv, t)
    out = jax.block_until_ready(out)

    ref = reference(x1, x4, wu, bu, wv, bv, t)
    assert out.shape == (B, A)
    # Tolerance accounts for bf16 MXU inputs and the approx EUP reciprocal in
    # the softmax denominator (f32 accumulation / epilogue otherwise).
    assert jnp.allclose(out, ref, atol=2e-3, rtol=2e-3), (out, ref)
    assert not jnp.any(jnp.isnan(out))

    print("KERNEL_OK")
</pallas_src>

<mosaic_0001>
module attributes {stable_mosaic.version = 11 : i64} {
  func.func @_decision_attn_kernel(%arg0: i32, %arg1: memref<8x64xbf16, #tpu.memory_space<vmem>>, %arg2: memref<64x256xbf16, #tpu.memory_space<vmem>>, %arg3: memref<1x256xf32, #tpu.memory_space<vmem>>, %arg4: memref<1x128xf32, #tpu.memory_space<vmem>>, %arg5: memref<8x128xf32, #tpu.memory_space<vmem>>) attributes {dimension_semantics = [#tpu.dimension_semantics<parallel>], iteration_bounds = array<i64: 1>, scalar_prefetch = 0 : i64, scratch_operands = 0 : i64, tpu.core_type = #tpu.core_type<tc>, window_params = [{transform_indices = @transform_0, window_bounds = array<i64: 8, 64>}, {pipeline_mode = #tpu.pipeline_mode<synchronous>, transform_indices = @transform_1, window_bounds = array<i64: 64, 256>}, {pipeline_mode = #tpu.pipeline_mode<synchronous>, transform_indices = @transform_2, window_bounds = array<i64: 1, 256>}, {pipeline_mode = #tpu.pipeline_mode<synchronous>, transform_indices = @transform_3, window_bounds = array<i64: 1, 128>}, {transform_indices = @transform_4, window_bounds = array<i64: 8, 128>}]} {
    %c0 = arith.constant 0 : index
    %c0_0 = arith.constant 0 : index
    %0 = vector.load %arg1[%c0, %c0_0] : memref<8x64xbf16, #tpu.memory_space<vmem>>, vector<8x64xbf16>
    %c0_1 = arith.constant 0 : index
    %c0_2 = arith.constant 0 : index
    %1 = vector.load %arg2[%c0_1, %c0_2] : memref<64x256xbf16, #tpu.memory_space<vmem>>, vector<64x256xbf16>
    %cst = arith.constant dense<0.000000e+00> : vector<8x256xf32>
    %2 = tpu.matmul %0, %1, %cst {dimension_numbers = #tpu.dot_dimension_numbers<[1], [0], [0], [1], [0, 0, 1, 1], [], []>} : vector<8x64xbf16>, vector<64x256xbf16>, vector<8x256xf32> -> vector<8x256xf32>
    %c0_3 = arith.constant 0 : index
    %c0_4 = arith.constant 0 : index
    %3 = vector.load %arg3[%c0_3, %c0_4] : memref<1x256xf32, #tpu.memory_space<vmem>>, vector<1x256xf32>
    %4 = vector.broadcast %3 : vector<1x256xf32> to vector<8x256xf32>
    %5 = arith.addf %2, %4 : vector<8x256xf32>
    %cst_5 = arith.constant 0.000000e+00 : f32
    %6 = vector.broadcast %cst_5 : f32 to vector<8x256xf32>
    %7 = arith.maximumf %5, %6 : vector<8x256xf32>
    %8 = vector.extract_strided_slice %7 {offsets = [0, 0], sizes = [8, 128], strides = [1, 1]} : vector<8x256xf32> to vector<8x128xf32>
    %9 = vector.extract_strided_slice %7 {offsets = [0, 128], sizes = [8, 128], strides = [1, 1]} : vector<8x256xf32> to vector<8x128xf32>
    %c0_6 = arith.constant 0 : index
    %c0_7 = arith.constant 0 : index
    %10 = vector.load %arg4[%c0_6, %c0_7] : memref<1x128xf32, #tpu.memory_space<vmem>>, vector<1x128xf32>
    %11 = vector.broadcast %10 : vector<1x128xf32> to vector<8x128xf32>
    %12 = arith.mulf %8, %11 : vector<8x128xf32>
    %cst_8 = arith.constant dense<0.000000e+00> : vector<8xf32>
    %13 = vector.multi_reduction <add>, %12, %cst_8 [1] : vector<8x128xf32> to vector<8xf32>
    %14 = vector.shape_cast %13 : vector<8xf32> to vector<8x1xf32>
    %15 = vector.broadcast %10 : vector<1x128xf32> to vector<8x128xf32>
    %16 = arith.mulf %9, %15 : vector<8x128xf32>
    %cst_9 = arith.constant dense<0.000000e+00> : vector<8xf32>
    %17 = vector.multi_reduction <add>, %16, %cst_9 [1] : vector<8x128xf32> to vector<8xf32>
    %18 = vector.shape_cast %17 : vector<8xf32> to vector<8x1xf32>
    %19 = arith.maximumf %14, %18 : vector<8x1xf32>
    %20 = arith.subf %14, %19 : vector<8x1xf32>
    %21 = math.exp %20 : vector<8x1xf32>
    %22 = arith.subf %18, %19 : vector<8x1xf32>
    %23 = math.exp %22 : vector<8x1xf32>
    %24 = arith.addf %21, %23 : vector<8x1xf32>
    %25 = tpu.reciprocal %24 {approx = true} : vector<8x1xf32> -> vector<8x1xf32>
    %26 = arith.mulf %21, %25 : vector<8x1xf32>
    %27 = arith.mulf %23, %25 : vector<8x1xf32>
    %28 = vector.broadcast %26 : vector<8x1xf32> to vector<8x128xf32>
    %29 = arith.mulf %28, %8 : vector<8x128xf32>
    %30 = vector.broadcast %27 : vector<8x1xf32> to vector<8x128xf32>
    %31 = arith.mulf %30, %9 : vector<8x128xf32>
    %32 = arith.addf %29, %31 : vector<8x128xf32>
    %c0_10 = arith.constant 0 : index
    %c0_11 = arith.constant 0 : index
    %33 = vector.load %arg5[%c0_10, %c0_11] : memref<8x128xf32, #tpu.memory_space<vmem>>, vector<8x128xf32>
    tpu.vector_store %arg5[%c0_10, %c0_11], %32 {strides = array<i32>} : memref<8x128xf32, #tpu.memory_space<vmem>>, vector<8x128xf32>,
    return
  }
  func.func @transform_0(%arg0: i32) -> (i32, i32) {
    %c0_i32 = arith.constant 0 : i32
    %c0_i32_0 = arith.constant 0 : i32
    return %arg0, %c0_i32 : i32, i32
  }
  func.func @transform_1(%arg0: i32) -> (i32, i32) {
    %c0_i32 = arith.constant 0 : i32
    %c0_i32_0 = arith.constant 0 : i32
    %c0_i32_1 = arith.constant 0 : i32
    return %c0_i32, %c0_i32_0 : i32, i32
  }
  func.func @transform_2(%arg0: i32) -> (i32, i32) {
    %c0_i32 = arith.constant 0 : i32
    %c0_i32_0 = arith.constant 0 : i32
    %c0_i32_1 = arith.constant 0 : i32
    return %c0_i32, %c0_i32_0 : i32, i32
  }
  func.func @transform_3(%arg0: i32) -> (i32, i32) {
    %c0_i32 = arith.constant 0 : i32
    %c0_i32_0 = arith.constant 0 : i32
    %c0_i32_1 = arith.constant 0 : i32
    return %c0_i32, %c0_i32_0 : i32, i32
  }
  func.func @transform_4(%arg0: i32) -> (i32, i32) {
    %c0_i32 = arith.constant 0 : i32
    %c0_i32_0 = arith.constant 0 : i32
    return %arg0, %c0_i32 : i32, i32
  }
}

</mosaic_0001>

<bundles_post_ra>
// kernel: tpu_custom_call.1
= control target key start
LH: loop header
LB: loop body
LE: loop exit
PB: predicated region body
PF: predicated region fallthrough
CT: control target
= control target key end

     0   :  { %9 = vsyncpa [#allocation3], 0  ;;  %s383_s0 = inlined_call_operand.hbm [shape: bf16[8,64], index: 0, kind: input, shape index: {}]   ;;  %s384_s1 = inlined_call_operand.hbm [shape: bf16[64,256], index: 1, kind: input, shape index: {}]   ;;  %s385_s2 = inlined_call_operand.vmem [shape: f32[1,256], index: 2, kind: input, shape index: {}]   ;;  %s386_s3 = inlined_call_operand.vmem [shape: f32[1,128], index: 3, kind: input, shape index: {}]   ;;  %s387_s4 = inlined_call_operand.hbm [shape: f32[8,128], index: 4, kind: output, shape index: {}]  }
   0x1   :  { %10 = vsyncpa [#allocation6], 0 }
   0x2   :  { %11 = vsyncpa [#allocation4], 0  ;;  %s303_s15 = smov [#allocation2]   ;;  %s304_s17 = smov [#allocation5]  }
   0x3   :  { %s18_s16 = sshll.u32 %s303_s15, 4  ;;  %s27_s18 = sshll.u32 %s304_s17, 4  ;;  %s19_s16 = int_to_ptr.vmem [resolvable:$true] %s18_s16  ;;  %s334_s18 = int_to_ptr.vmem [resolvable:$true] %s27_s18 }
   0x4   :  { %s231_s21 = scalar_lea.hbm %s383_s0, 64 }
   0x5   :  { %p232_p0 = scmp.ne.s32.totalorder %s383_s0, %s231_s21  ;;  %p235_p1 = scmp.lt.u32.totalorder %s231_s21, %s383_s0 }
   0x7   :  { %p237_p2 = pnand %p235_p1, %p232_p0 }
   0x9   :  { %240 = shalt.err (!%p237_p2)
}
   0xa   :  { %s241_s26 = scalar_lea.vmem %s19_s16, 64  ;;  %p246_p4 = scmp.lt.s32.totalorder %s19_s16, %s19_s16 }
   0xb   :  { %p242_p3 = scmp.ne.s32.totalorder %s19_s16, %s241_s26  ;;  %p247_p5 = scmp.lt.s32.totalorder %s241_s26, %s241_s26 }
   0xd   :  { %p248_p6 = por %p247_p5, %p246_p4 }
   0xf   :  { %p249_p7 = pnand %p248_p6, %p242_p3 }
  0x11   :  { %252 = shalt.err (!%p249_p7)
}
  0x12   :  { %21 = dma.hbm_to_vmem [thread:$0]  %s383_s0, 64, %s19_s16, [#allocation3]  }
  0x13   :  { %s253_s5 = scalar_lea.hbm %s384_s1, 1024 }
  0x14   :  { %p254_p8 = scmp.ne.s32.totalorder %s384_s1, %s253_s5  ;;  %p257_p9 = scmp.lt.u32.totalorder %s253_s5, %s384_s1 }
  0x16   :  { %p259_p10 = pnand %p257_p9, %p254_p8 }
  0x18   :  { %262 = shalt.err (!%p259_p10)
}
  0x19   :  { %s263_s10 = scalar_lea.vmem %s334_s18, 1024  ;;  %p268_p12 = scmp.lt.s32.totalorder %s334_s18, %s334_s18 }
  0x1a   :  { %p264_p11 = scmp.ne.s32.totalorder %s334_s18, %s263_s10  ;;  %p269_p13 = scmp.lt.s32.totalorder %s263_s10, %s263_s10 }
  0x1c   :  { %p270_p0 = por %p269_p13, %p268_p12 }
  0x1e   :  { %p271_p1 = pnand %p270_p0, %p264_p11 }
  0x20   :  { %274 = shalt.err (!%p271_p1)
}
  0x21   :  { %s305_s0 = smov 128   ;;  %s306_s11 = smov 8  }
  0x22   :  { %33 = dma.hbm_to_vmem [thread:$0]  %s384_s1, 1024, %s334_s18, [#allocation6], %s305_s0, %s305_s0, %s306_s11  }
  0x23   :  { %297 = dma.done.wait [#allocation3], 64  }
  0x24   :  { %298 = vsyncadd [#allocation3], 4294967232 }
  0x25   :  { %299 = dma.done.wait [#allocation6], 1024  }
  0x26   :  { %300 = vsyncadd [#allocation6], 4294966272  ;;  %v307_v0 = vmov 0   ;;  %v213_v1 = vld [vmem:[#allocation5 + $0x4] ss:$8 sps:$4 sm:$0xff]   ;;  %vm106_vm0 = vcmask 523264   ;;  %v56_v10 = vlaneseq }
  0x27   :  { %142 = vmatprep.mubr.bf16.mxu0 %v307_v0  ;;  %v215_v2 = vld [vmem:[#allocation5] ss:$8 sps:$4 sm:$0xff]   ;;  %110 = vmatprep.subr.bf16.mxu0 %v213_v1  ;;  %v216_v3 = vld [vmem:[#allocation5 + $0x14] ss:$8 sps:$4 sm:$0xff]   ;;  %v218_v4 = vld [vmem:[#allocation5 + $0x10] ss:$8 sps:$4 sm:$0xff]  }
  0x28   :  { %111 = vmatpush1.bf16.msra.mxu0 %v215_v2  ;;  %v219_v5 = vld [vmem:[#allocation5 + $0x24] ss:$8 sps:$4 sm:$0xff]   ;;  %v221_v6 = vld [vmem:[#allocation5 + $0x20] ss:$8 sps:$4 sm:$0xff]   ;;  %v222_v7 = vld [vmem:[#allocation5 + $0x34] ss:$8 sps:$4 sm:$0xff]  }
  0x29   :  { %112 = vmatprep.subr.bf16.mxu0 %v216_v3  ;;  %v224_v8 = vld [vmem:[#allocation5 + $0x30] ss:$8 sps:$4 sm:$0xff]   ;;  %v45_v9 = vld [vmem:[#allocation2] sm:$0xf]  ;;  %v57_v11 = vshrl.u32 %v56_v10, 7 }
  0x2a   :  { %v54_v13 = vld [vmem:[%s385_s2] sm:$0x3]  ;;  %s308_s2 = smov [#allocation7]  }
  0x2b   :  { %v58_v12 = vsub.s32 0, %v57_v11  ;;  %v62_v14 = vsub.s32 1, %v57_v11  ;;  %v206_v22 = vld [vmem:[%s386_s3] ss:$0 sm:$0xff]  ;;  %s187_s3 = sshll.u32 %s308_s2, 4  ;;  %s188_s3 = int_to_ptr.vmem [resolvable:$true] %s187_s3 }
  0x2c   :  { %113 = vmatpush1.bf16.msra.mxu0 %v218_v4  ;;  %s275_s17 = scalar_lea.vmem %s188_s3, 128  ;;  %p280_p3 = scmp.lt.s32.totalorder %s188_s3, %s188_s3 }
  0x2d   :  { %114 = vmatprep.subr.bf16.mxu0 %v219_v5  ;;  %v59_v15 = vrot.slane %v54_v13, %v58_v12  ;;  %v63_v16 = vrot.slane %v54_v13, %v62_v14  ;;  %p276_p2 = scmp.ne.s32.totalorder %s188_s3, %s275_s17  ;;  %p281_p4 = scmp.lt.s32.totalorder %s275_s17, %s275_s17 }
  0x2f   :  { %p282_p5 = por %p281_p4, %p280_p3 }
  0x30   :  { %115 = vmatpush1.bf16.msra.mxu0 %v221_v6 }
  0x31   :  { %116 = vmatprep.subr.bf16.mxu0 %v222_v7  ;;  %p283_p6 = pnand %p282_p5, %p276_p2 }
  0x34   :  { %117 = vmatpush1.bf16.msra.mxu0 %v224_v8 }
  0x37   :  { %205 = vmatmul.mubr.msk.bf16.vlgmr.msra.gmra.mrb[0].mxu0 %vm106_vm0, %v45_v9 }
 0x10a   :  { %v144_v17 = vpop.f32.mrb[0].mxu0 }
 0x10b   :  { %v145_v18 = vadd.f32 %v144_v17, %v59_v15  ;;  %v146_v19 = vpop.f32.mrb[1].mxu0 }
 0x10c   :  { %v147_v20 = vadd.f32 %v146_v19, %v63_v16  ;;  %v148_v21 = vpop.f32.mrb[2].mxu0 }
 0x10d   :  { %v151_v23 = vmax.f32 %v145_v18, 0.0  ;;  %v149_v24 = vpop.f32.mrb[3].mxu0 }
 0x10e   :  { %v152_v25 = vmax.f32 %v147_v20, 0.0 }
 0x10f   :  { %v160_v26 = vmul.f32 %v206_v22, %v151_v23 }
 0x110   :  { %v163_v27 = vmul.f32 %v206_v22, %v152_v25 }
 0x111   :  { %161 = vadd.xlane.f32.xlu0 %v160_v26 }
 0x115   :  { %164 = vadd.xlane.f32.xlu0 %v163_v27 }
 0x19e   :  { %v162_v28 = vpop.xlane.xlu0 %161 }
 0x1a2   :  { %v165_v29 = vpop.xlane.xlu0 %164 }
 0x1a3   :  { %v166_v30 = vmax.f32 %v162_v28, %v165_v29 }
 0x1a5   :  { %v167_v31 = vsub.f32 %v162_v28, %v166_v30  ;;  %v170_v32 = vsub.f32 %v165_v29, %v166_v30 }
 0x1a7   :  { %v168_v33 = vmul.f32 1.442695, %v167_v31  ;;  %v171_v34 = vmul.f32 1.442695, %v170_v32 }
 0x1a9   :  { %225 = vpow2.f32 %v168_v33 }
 0x1aa   :  { %227 = vpow2.f32 %v171_v34 }
 0x1b3   :  { %v226_v35 = vpop.eup %225 }
 0x1b4   :  { %v228_v36 = vpop.eup %227 }
 0x1b5   :  { %v173_v37 = vadd.f32 %v228_v36, %v226_v35 }
 0x1b7   :  { %229 = vrcp.f32 %v173_v37 }
 0x1c1   :  { %v230_v38 = vpop.eup %229 }
 0x1c2   :  { %v175_v39 = vmul.f32 %v230_v38, %v226_v35  ;;  %v176_v40 = vmul.f32 %v230_v38, %v228_v36 }
 0x1c4   :  { %v177_v41 = vmul.f32 %v175_v39, %v151_v23  ;;  %v178_v42 = vmul.f32 %v176_v40, %v152_v25 }
 0x1c6   :  { %v179_v43 = vadd.f32 %v178_v42, %v177_v41 }
 0x1c8   :  { %180 = vst [vmem:[#allocation7] sm:$0xff] %v179_v43 }
 0x1c9   :  { %286 = shalt.err (!%p283_p6)
}
 0x1ca   :  { %s287_s20 = scalar_lea.hbm %s387_s4, 128 }
 0x1cb   :  { %p288_p7 = scmp.ne.s32.totalorder %s387_s4, %s287_s20  ;;  %p291_p8 = scmp.lt.u32.totalorder %s287_s20, %s387_s4 }
 0x1cd   :  { %p293_p9 = pnand %p291_p8, %p288_p7 }
 0x1cf   :  { %296 = shalt.err (!%p293_p9)
}
 0x1d0   :  { %190 = dma.vmem_to_hbm [thread:$0]  %s188_s3, 128, %s387_s4, [#allocation4]  }
 0x1d1   :  { %301 = dma.done.wait [#allocation4], 128  }
 0x1d2   :  { %302 = vsyncadd [#allocation4], 4294967168 }
 0x1d3   :  { %194 = vsyncpa [#allocation3], 1 }
 0x1d4   :  { %195 = vsyncpa [#allocation6], 1 }
 0x1d5   :  { %196 = vsyncpa [#allocation4], 1 }

</bundles_post_ra>
